<compile_context>
chip_gen: v7x
topology: tpu7x:2x2x1
jax: 0.10.0
libtpu: 0.0.40
codegen_flags: <defaults>
</compile_context>

<pallas_src>
import jax
import jax.numpy as jnp
from jax.experimental import pallas as pl
from jax.experimental.pallas import tpu as pltpu

N_S = 17      # Walker2d-v2 observation dim
HIDDEN = 64
LANE = 128


def _round_up(x, m):
    return (x + m - 1) // m * m


def critic_kernel(s_ref, w1_ref, b1_ref, w2_ref, b2_ref, w3_ref, b3_ref, out_ref):
    # fc1 + tanh  (MXU matmul with f32 accumulation; tanh runs on the EUP slot)
    x = jnp.dot(s_ref[...], w1_ref[...], preferred_element_type=jnp.float32)
    x = jnp.tanh(x + b1_ref[...])
    # fc2 + tanh
    x = jnp.dot(x, w2_ref[...], preferred_element_type=jnp.float32)
    x = jnp.tanh(x + b2_ref[...])
    # fc3 (64 -> 1): per-lane multiply + cross-lane reduction (VALU + XLU)
    # instead of an N=1 MXU matmul; b3 (SMEM scalar) folded in here.
    v = jnp.sum(x * w3_ref[...], axis=-1) + b3_ref[0, 0]      # (batch_tile,)
    # Lane-dense store: one (1, 1, batch_tile) row per grid step.
    out_ref[...] = v[None, None, :]


def _choose_batch_tile(B, batch_tile):
    b_lane = _round_up(max(B, 1), LANE)
    bt = min(_round_up(batch_tile, LANE), b_lane)
    # v7x has 2 TensorCores per chip: keep >= 2 "parallel" grid steps whenever
    # the batch allows so Mosaic can shard the grid across cores.
    if b_lane >= 2 * LANE and b_lane // bt < 2:
        bt = _round_up((b_lane + 1) // 2, LANE)
    return bt


def critic_forward(s, w1, b1, w2, b2, w3, b3, *, batch_tile=2048):
    """values = fc3(tanh(fc2(tanh(fc1(s))))), s: (B, n_s) float32 -> (B, 1)."""
    B, n_s = s.shape
    hidden = w1.shape[1]
    assert w1.shape[0] == n_s

    bt = _choose_batch_tile(B, batch_tile)
    B_pad = _round_up(B, bt)
    num_tiles = B_pad // bt

    s = s.astype(jnp.float32)
    if B_pad != B:
        # Zero-pad the batch dim only (feature dim stays at n_s).  Padded rows
        # produce finite garbage that is sliced off below -- never reduce over
        # the padded output.
        s_p = jnp.zeros((B_pad, n_s), jnp.float32).at[:B, :].set(s)
    else:
        s_p = s

    w1_f = w1.astype(jnp.float32)                            # (n_s, hidden)
    b1_f = jnp.reshape(b1, (1, hidden)).astype(jnp.float32)
    w2_f = w2.astype(jnp.float32)                            # (hidden, hidden)
    b2_f = jnp.reshape(b2, (1, hidden)).astype(jnp.float32)
    w3_row = jnp.reshape(w3, (1, hidden)).astype(jnp.float32)   # (hidden,1)->(1,hidden)
    b3_s = jnp.reshape(b3, (1, 1)).astype(jnp.float32)          # SMEM scalar

    full = lambda i: (0, 0)   # weights/biases resident across all grid steps

    cost = pl.CostEstimate(
        flops=2 * B_pad * (n_s * hidden + hidden * hidden + hidden),
        transcendentals=2 * B_pad * hidden,
        bytes_accessed=4 * (B_pad * n_s + n_s * hidden + hidden * hidden
                            + 3 * hidden + 1 + B_pad),
    )

    out = pl.pallas_call(
        critic_kernel,
        out_shape=jax.ShapeDtypeStruct((num_tiles, 1, bt), jnp.float32),
        grid_spec=pltpu.PrefetchScalarGridSpec(
            num_scalar_prefetch=0,
            grid=(num_tiles,),
            in_specs=[
                pl.BlockSpec((bt, n_s), lambda i: (i, 0)),       # s tile (unpadded K)
                pl.BlockSpec((n_s, hidden), full),               # W1
                pl.BlockSpec((1, hidden), full),                 # b1
                pl.BlockSpec((hidden, hidden), full),            # W2
                pl.BlockSpec((1, hidden), full),                 # b2
                pl.BlockSpec((1, hidden), full),                 # W3 as a row
                pl.BlockSpec(memory_space=pltpu.MemorySpace.SMEM),  # b3 scalar
            ],
            out_specs=pl.BlockSpec((1, 1, bt), lambda i: (i, 0, 0)),
        ),
        compiler_params=pltpu.CompilerParams(
            dimension_semantics=("parallel",)),
        cost_estimate=cost,
    )(s_p, w1_f, b1_f, w2_f, b2_f, w3_row, b3_s)

    # Un-pad and restore the (B, 1) module output shape.
    return out.reshape(B_pad, 1)[:B]


def init_params(key, n_s=N_S, hidden=HIDDEN):
    # Mirrors Critic.set_init semantics: weights ~ N(0, 0.1), biases = 0.
    # fc3 additionally has its weight scaled by 0.1 and bias zeroed, as in __init__.
    k1, k2, k3 = jax.random.split(key, 3)
    w1 = jax.random.normal(k1, (n_s, hidden), jnp.float32) * 0.1
    b1 = jnp.zeros((1, hidden), jnp.float32)
    w2 = jax.random.normal(k2, (hidden, hidden), jnp.float32) * 0.1
    b2 = jnp.zeros((1, hidden), jnp.float32)
    w3 = (jax.random.normal(k3, (hidden, 1), jnp.float32) * 0.1) * 0.1
    b3 = jnp.zeros((1, 1), jnp.float32)
    return w1, b1, w2, b2, w3, b3


def reference_forward(s, w1, b1, w2, b2, w3, b3):
    hp = jax.lax.Precision.HIGHEST
    x = jnp.tanh(jnp.dot(s, w1, precision=hp) + b1)
    x = jnp.tanh(jnp.dot(x, w2, precision=hp) + b2)
    return jnp.dot(x, w3, precision=hp) + b3


if __name__ == "__main__":
    key = jax.random.PRNGKey(0)
    k_s, k_p, k_s2 = jax.random.split(key, 3)

    params = init_params(k_p)

    # Small, latency-style batch (single grid step, batch padded 8 -> 128).
    B = 8
    s = jax.random.normal(k_s, (B, N_S), jnp.float32)
    values = jax.block_until_ready(critic_forward(s, *params))
    ref = reference_forward(s, *params)
    assert values.shape == (B, 1)
    assert jnp.allclose(values, ref, atol=1e-4, rtol=1e-4), (values, ref)

    # Non-multiple batch exercising batch padding and the 2-tile grid
    # (megacore / multi-step pipeline) path.
    B2 = 300
    s2 = jax.random.normal(k_s2, (B2, N_S), jnp.float32)
    values2 = jax.block_until_ready(critic_forward(s2, *params))
    ref2 = reference_forward(s2, *params)
    assert values2.shape == (B2, 1)
    assert jnp.allclose(values2, ref2, atol=1e-4, rtol=1e-4), (values2, ref2)

    print("KERNEL_OK")
</pallas_src>

<mosaic_0001>
module attributes {stable_mosaic.version = 11 : i64} {
  func.func @critic_kernel(%arg0: i32, %arg1: memref<128x17xf32, #tpu.memory_space<vmem>>, %arg2: memref<17x64xf32, #tpu.memory_space<vmem>>, %arg3: memref<1x64xf32, #tpu.memory_space<vmem>>, %arg4: memref<64x64xf32, #tpu.memory_space<vmem>>, %arg5: memref<1x64xf32, #tpu.memory_space<vmem>>, %arg6: memref<1x64xf32, #tpu.memory_space<vmem>>, %arg7: memref<1x1xf32, #tpu.memory_space<smem>>, %arg8: memref<1x1x128xf32, #tpu.memory_space<vmem>>) attributes {dimension_semantics = [#tpu.dimension_semantics<parallel>], iteration_bounds = array<i64: 1>, scalar_prefetch = 0 : i64, scratch_operands = 0 : i64, tpu.core_type = #tpu.core_type<tc>, window_params = [{transform_indices = @transform_0, window_bounds = array<i64: 128, 17>}, {pipeline_mode = #tpu.pipeline_mode<synchronous>, transform_indices = @transform_1, window_bounds = array<i64: 17, 64>}, {pipeline_mode = #tpu.pipeline_mode<synchronous>, transform_indices = @transform_2, window_bounds = array<i64: 1, 64>}, {pipeline_mode = #tpu.pipeline_mode<synchronous>, transform_indices = @transform_3, window_bounds = array<i64: 64, 64>}, {pipeline_mode = #tpu.pipeline_mode<synchronous>, transform_indices = @transform_4, window_bounds = array<i64: 1, 64>}, {pipeline_mode = #tpu.pipeline_mode<synchronous>, transform_indices = @transform_5, window_bounds = array<i64: 1, 64>}, {transform_indices = @transform_6, window_bounds = array<i64: 1, 1>}, {transform_indices = @transform_7, window_bounds = array<i64: 1, 1, 128>}]} {
    %c0 = arith.constant 0 : index
    %c0_0 = arith.constant 0 : index
    %0 = vector.load %arg1[%c0, %c0_0] : memref<128x17xf32, #tpu.memory_space<vmem>>, vector<128x17xf32>
    %c0_1 = arith.constant 0 : index
    %c0_2 = arith.constant 0 : index
    %1 = vector.load %arg2[%c0_1, %c0_2] : memref<17x64xf32, #tpu.memory_space<vmem>>, vector<17x64xf32>
    %cst = arith.constant dense<0.000000e+00> : vector<128x64xf32>
    %2 = tpu.matmul %0, %1, %cst {dimension_numbers = #tpu.dot_dimension_numbers<[1], [0], [0], [1], [0, 0, 1, 1], [], []>} : vector<128x17xf32>, vector<17x64xf32>, vector<128x64xf32> -> vector<128x64xf32>
    %c0_3 = arith.constant 0 : index
    %c0_4 = arith.constant 0 : index
    %3 = vector.load %arg3[%c0_3, %c0_4] : memref<1x64xf32, #tpu.memory_space<vmem>>, vector<1x64xf32>
    %4 = vector.broadcast %3 : vector<1x64xf32> to vector<128x64xf32>
    %5 = arith.addf %2, %4 : vector<128x64xf32>
    %6 = math.tanh %5 : vector<128x64xf32>
    %c0_5 = arith.constant 0 : index
    %c0_6 = arith.constant 0 : index
    %7 = vector.load %arg4[%c0_5, %c0_6] : memref<64x64xf32, #tpu.memory_space<vmem>>, vector<64x64xf32>
    %cst_7 = arith.constant dense<0.000000e+00> : vector<128x64xf32>
    %8 = tpu.matmul %6, %7, %cst_7 {dimension_numbers = #tpu.dot_dimension_numbers<[1], [0], [0], [1], [0, 0, 1, 1], [], []>} : vector<128x64xf32>, vector<64x64xf32>, vector<128x64xf32> -> vector<128x64xf32>
    %c0_8 = arith.constant 0 : index
    %c0_9 = arith.constant 0 : index
    %9 = vector.load %arg5[%c0_8, %c0_9] : memref<1x64xf32, #tpu.memory_space<vmem>>, vector<1x64xf32>
    %10 = vector.broadcast %9 : vector<1x64xf32> to vector<128x64xf32>
    %11 = arith.addf %8, %10 : vector<128x64xf32>
    %12 = math.tanh %11 : vector<128x64xf32>
    %c0_10 = arith.constant 0 : index
    %c0_11 = arith.constant 0 : index
    %13 = vector.load %arg6[%c0_10, %c0_11] : memref<1x64xf32, #tpu.memory_space<vmem>>, vector<1x64xf32>
    %14 = vector.broadcast %13 : vector<1x64xf32> to vector<128x64xf32>
    %15 = arith.mulf %12, %14 : vector<128x64xf32>
    %cst_12 = arith.constant dense<0.000000e+00> : vector<128xf32>
    %16 = vector.multi_reduction <add>, %15, %cst_12 [1] : vector<128x64xf32> to vector<128xf32>
    %c0_13 = arith.constant 0 : index
    %c0_14 = arith.constant 0 : index
    %17 = memref.load %arg7[%c0_13, %c0_14] : memref<1x1xf32, #tpu.memory_space<smem>>
    %18 = vector.broadcast %17 : f32 to vector<128xf32>
    %19 = arith.addf %16, %18 : vector<128xf32>
    %20 = vector.shape_cast %19 : vector<128xf32> to vector<1x1x128xf32>
    %c0_15 = arith.constant 0 : index
    %c0_16 = arith.constant 0 : index
    %c0_17 = arith.constant 0 : index
    %21 = vector.load %arg8[%c0_15, %c0_16, %c0_17] : memref<1x1x128xf32, #tpu.memory_space<vmem>>, vector<1x1x128xf32>
    tpu.vector_store %arg8[%c0_15, %c0_16, %c0_17], %20 {strides = array<i32>} : memref<1x1x128xf32, #tpu.memory_space<vmem>>, vector<1x1x128xf32>,
    return
  }
  func.func @transform_0(%arg0: i32) -> (i32, i32) {
    %c0_i32 = arith.constant 0 : i32
    %c0_i32_0 = arith.constant 0 : i32
    return %arg0, %c0_i32 : i32, i32
  }
  func.func @transform_1(%arg0: i32) -> (i32, i32) {
    %c0_i32 = arith.constant 0 : i32
    %c0_i32_0 = arith.constant 0 : i32
    %c0_i32_1 = arith.constant 0 : i32
    return %c0_i32, %c0_i32_0 : i32, i32
  }
  func.func @transform_2(%arg0: i32) -> (i32, i32) {
    %c0_i32 = arith.constant 0 : i32
    %c0_i32_0 = arith.constant 0 : i32
    %c0_i32_1 = arith.constant 0 : i32
    return %c0_i32, %c0_i32_0 : i32, i32
  }
  func.func @transform_3(%arg0: i32) -> (i32, i32) {
    %c0_i32 = arith.constant 0 : i32
    %c0_i32_0 = arith.constant 0 : i32
    %c0_i32_1 = arith.constant 0 : i32
    return %c0_i32, %c0_i32_0 : i32, i32
  }
  func.func @transform_4(%arg0: i32) -> (i32, i32) {
    %c0_i32 = arith.constant 0 : i32
    %c0_i32_0 = arith.constant 0 : i32
    %c0_i32_1 = arith.constant 0 : i32
    return %c0_i32, %c0_i32_0 : i32, i32
  }
  func.func @transform_5(%arg0: i32) -> (i32, i32) {
    %c0_i32 = arith.constant 0 : i32
    %c0_i32_0 = arith.constant 0 : i32
    %c0_i32_1 = arith.constant 0 : i32
    return %c0_i32, %c0_i32_0 : i32, i32
  }
  func.func @transform_6(%arg0: i32) -> (i32, i32) {
    %c0_i32 = arith.constant 0 : i32
    %c0_i32_0 = arith.constant 0 : i32
    %c0_i32_1 = arith.constant 0 : i32
    return %c0_i32, %c0_i32_0 : i32, i32
  }
  func.func @transform_7(%arg0: i32) -> (i32, i32, i32) {
    %c0_i32 = arith.constant 0 : i32
    %c0_i32_0 = arith.constant 0 : i32
    %c0_i32_1 = arith.constant 0 : i32
    return %arg0, %c0_i32, %c0_i32_0 : i32, i32, i32
  }
}

</mosaic_0001>

<bundles_post_ra>
// kernel: tpu_custom_call.1
= control target key start
LH: loop header
LB: loop body
LE: loop exit
PB: predicated region body
PF: predicated region fallthrough
CT: control target
= control target key end

     0   :  { %vm54_vm0 = vcmask 138240   ;;  %vm103_vm1 = vcmask 1040384   ;;  %s1294_s0 = inlined_call_operand.vmem [shape: f32[128,17], index: 0, kind: input, shape index: {}]   ;;  %s1295_s1 = inlined_call_operand.vmem [shape: f32[17,64], index: 1, kind: input, shape index: {}]   ;;  %s1296_s2 = inlined_call_operand.vmem [shape: f32[1,64], index: 2, kind: input, shape index: {}]   ;;  %s1297_s3 = inlined_call_operand.vmem [shape: f32[64,64], index: 3, kind: input, shape index: {}]   ;;  %s1298_s4 = inlined_call_operand.vmem [shape: f32[1,64], index: 4, kind: input, shape index: {}]   ;;  %s1299_s5 = inlined_call_operand.vmem [shape: f32[1,64], index: 5, kind: input, shape index: {}]   ;;  %s1300_s6 = inlined_call_operand.<no memory space> [shape: f32[1,1], index: 6, kind: input, shape index: {}]   ;;  %s1301_s7 = inlined_call_operand.hbm [shape: f32[1,1,128], index: 7, kind: output, shape index: {}]  }
   0x1   :  { %v44_v0 = vld [vmem:[%s1295_s1] sm:$0xff]  ;;  %v45_v1 = vld [vmem:[%s1295_s1 + $0x8] sm:$0xff]  ;;  %v46_v4 = vld [vmem:[%s1295_s1 + $0x10] sm:$0x1] }
   0x2   :  { %v874_v2 = vpack.c.bf16 %v45_v1, %v44_v0  ;;  %v28_v3 = vld [vmem:[%s1294_s0] sm:$0xff]  ;;  %v29_v5 = vld [vmem:[%s1294_s0 + $0x8] sm:$0xff]  ;;  %v30_v6 = vld [vmem:[%s1294_s0 + $0x10] sm:$0xff] }
   0x3   :  { %810 = vmatprep.mubr.msk.f32.mxu0 %vm54_vm0, %v28_v3  ;;  %v268_v7 = vld [vmem:[%s1297_s3] sm:$0xff]  ;;  %v269_v8 = vld [vmem:[%s1297_s3 + $0x8] sm:$0xff]  ;;  %v270_v10 = vld [vmem:[%s1297_s3 + $0x10] sm:$0xff] }
   0x4   :  { %875 = vmatprep.subr.bf16.mxu0 %v874_v2  ;;  %v878_v9 = vpack.c.bf16 %v269_v8, %v268_v7  ;;  %v271_v11 = vld [vmem:[%s1297_s3 + $0x18] sm:$0xff] }
   0x5   :  { %877 = vmatpush3.bf16.msra.mxu0 %v874_v2 }
   0x6   :  { %808 = vmatprep.subr.msk.mxu0 %vm103_vm1, %v46_v4 }
   0x7   :  { %13 = vsyncpa [#allocation4], 0  ;;  %v882_v12 = vpack.c.bf16 %v271_v11, %v270_v10  ;;  %v31_v13 = vld [vmem:[%s1294_s0 + $0x18] sm:$0xff]  ;;  %v32_v14 = vld [vmem:[%s1294_s0 + $0x20] sm:$0xff]  ;;  %894 = vmatprep.subr.bf16.mxu1 %v878_v9  ;;  %vm283_vm2 = vcmask 523264   ;;  %vm609_vm3 = vcmask 130112  }
   0x8   :  { %898 = vmatpush3.bf16.msra.mxu1 %v878_v9  ;;  %v33_v15 = vld [vmem:[%s1294_s0 + $0x28] sm:$0xff]  ;;  %v34_v16 = vld [vmem:[%s1294_s0 + $0x30] sm:$0xff]  ;;  %v35_v17 = vld [vmem:[%s1294_s0 + $0x38] sm:$0xff]  ;;  %vm616_vm4 = vcmask 195712   ;;  %vm623_vm5 = vcmask 261312   ;;  %vm630_vm6 = vcmask 326912  }
   0x9   :  { %809 = vmatpush3.msk.msra.mxu0 %vm103_vm1, %v46_v4  ;;  %895 = vmatprep.subr.bf16.mxu1 %v882_v12  ;;  %v36_v18 = vld [vmem:[%s1294_s0 + $0x40] sm:$0xff]  ;;  %v37_v19 = vld [vmem:[%s1294_s0 + $0x48] sm:$0xff]  ;;  %v38_v20 = vld [vmem:[%s1294_s0 + $0x50] sm:$0xff]  ;;  %vm637_vm7 = vcmask 392512   ;;  %vm644_vm8 = vcmask 458112   ;;  %vm651_vm9 = vcmask 523712  }
   0xa   :  { %811 = vmatmul.mubr.msk.f32.vlgmr.msra.gmra.mrb[0].mxu0 %vm54_vm0, %v29_v5  ;;  %879 = vmatprep.subr.bf16.mxu0 %v878_v9  ;;  %v39_v21 = vld [vmem:[%s1294_s0 + $0x58] sm:$0xff]  ;;  %v40_v22 = vld [vmem:[%s1294_s0 + $0x60] sm:$0xff]  ;;  %v41_v23 = vld [vmem:[%s1294_s0 + $0x68] sm:$0xff]  ;;  %vm658_vm10 = vcmask 589312   ;;  %vm665_vm11 = vcmask 654912   ;;  %vm672_vm12 = vcmask 720512  }
   0xb   :  { %813 = vmatprep.mubr.msk.f32.mxu0 %vm54_vm0, %v30_v6  ;;  %881 = vmatpush3.bf16.msra.mxu0 %v878_v9  ;;  %v42_v24 = vld [vmem:[%s1294_s0 + $0x70] sm:$0xff]  ;;  %v43_v25 = vld [vmem:[%s1294_s0 + $0x78] sm:$0xff]  ;;  %v272_v26 = vld [vmem:[%s1297_s3 + $0x20] sm:$0xff]  ;;  %vm679_vm13 = vcmask 786112   ;;  %vm686_vm14 = vcmask 851712   ;;  %vm693_vm15 = vcmask 917312  }
   0xc   :  { %883 = vmatprep.subr.bf16.mxu0 %v882_v12  ;;  %899 = vmatpush3.bf16.msra.mxu1 %v882_v12  ;;  %v273_v27 = vld [vmem:[%s1297_s3 + $0x28] sm:$0xff]  ;;  %v274_v29 = vld [vmem:[%s1297_s3 + $0x30] sm:$0xff]  ;;  %v275_v30 = vld [vmem:[%s1297_s3 + $0x38] sm:$0xff]  ;;  %vm707_vm1 = vcmask 1048512  }
   0xd   :  { %v886_v28 = vpack.c.bf16 %v273_v27, %v272_v26  ;;  %v890_v31 = vpack.c.bf16 %v275_v30, %v274_v29  ;;  %v1132_v32 = vld [vmem:[%s1296_s2] ss:$0 sm:$0xff] }
   0xe   :  { %814 = vmatmul.mubr.msk.f32.gmra.mrb[2].mxu0 %vm54_vm0, %v31_v13  ;;  %v1180_v30 = vld [vmem:[%s1299_s5] ss:$0 sm:$0xff] }
   0xf   :  { %816 = vmatprep.mubr.msk.f32.mxu0 %vm54_vm0, %v32_v14  ;;  %885 = vmatpush3.bf16.msra.mxu0 %v882_v12 }
  0x10   :  { %887 = vmatprep.subr.bf16.mxu0 %v886_v28  ;;  %896 = vmatprep.subr.bf16.mxu1 %v886_v28 }
  0x11   :  { %900 = vmatpush3.bf16.msra.mxu1 %v886_v28 }
  0x12   :  { %817 = vmatmul.mubr.msk.f32.gmra.mrb[4].mxu0 %vm54_vm0, %v33_v15  ;;  %897 = vmatprep.subr.bf16.mxu1 %v890_v31 }
  0x13   :  { %819 = vmatprep.mubr.msk.f32.mxu0 %vm54_vm0, %v34_v16  ;;  %889 = vmatpush3.bf16.msra.mxu0 %v886_v28 }
  0x14   :  { %891 = vmatprep.subr.bf16.mxu0 %v890_v31 }
  0x15   :  { %901 = vmatpush3.bf16.msra.mxu1 %v890_v31 }
  0x16   :  { %820 = vmatmul.mubr.msk.f32.gmra.mrb[6].mxu0 %vm54_vm0, %v35_v17  ;;  %v1169_v17 = vld [vmem:[%s1298_s4] ss:$0 sm:$0xff] }
  0x17   :  { %822 = vmatprep.mubr.msk.f32.mxu0 %vm54_vm0, %v36_v18  ;;  %893 = vmatpush3.bf16.msra.mxu0 %v890_v31 }
  0x1a   :  { %823 = vmatmul.mubr.msk.f32.gmra.mrb[8].mxu0 %vm54_vm0, %v37_v19 }
  0x1b   :  { %825 = vmatprep.mubr.msk.f32.mxu0 %vm54_vm0, %v38_v20 }
  0x1e   :  { %826 = vmatmul.mubr.msk.f32.gmra.mrb[10].mxu0 %vm54_vm0, %v39_v21 }
  0x1f   :  { %828 = vmatprep.mubr.msk.f32.mxu0 %vm54_vm0, %v40_v22 }
  0x22   :  { %829 = vmatmul.mubr.msk.f32.gmra.mrb[12].mxu0 %vm54_vm0, %v41_v23 }
  0x23   :  { %831 = vmatprep.mubr.msk.f32.mxu0 %vm54_vm0, %v42_v24 }
  0x26   :  { %832 = vmatmul.mubr.msk.f32.gmra.mrb[14].mxu0 %vm54_vm0, %v43_v25  ;;  %vm700_vm0 = vcmask 982912  }
  0xdd   :  { %v812_v33 = vpop.f32.mrb[0].mxu0 }
  0xde   :  { %v179_v34 = vadd.f32 %v812_v33, %v1132_v32  ;;  %v173_v35 = vpop.f32.mrb[1].mxu0 }
  0xdf   :  { %v174_v36 = vadd.f32 %v1132_v32, %v173_v35 }
  0xe1   :  { %903 = vtanh.f32 %v174_v36  ;;  %v815_v37 = vpop.f32.mrb[2].mxu0 }
  0xe2   :  { %905 = vtanh.f32 %v179_v34  ;;  %v189_v38 = vadd.f32 %v815_v37, %v1132_v32  ;;  %v183_v39 = vpop.f32.mrb[3].mxu0 }
  0xe3   :  { %v184_v40 = vadd.f32 %v1132_v32, %v183_v39 }
  0xe5   :  { %907 = vtanh.f32 %v184_v40  ;;  %v818_v41 = vpop.f32.mrb[4].mxu0 }
  0xe6   :  { %909 = vtanh.f32 %v189_v38  ;;  %v199_v42 = vadd.f32 %v818_v41, %v1132_v32  ;;  %v193_v43 = vpop.f32.mrb[5].mxu0 }
  0xe7   :  { %v194_v44 = vadd.f32 %v1132_v32, %v193_v43 }
  0xe8   :  { %911 = vtanh.f32 %v199_v42 }
  0xe9   :  { %913 = vtanh.f32 %v194_v44  ;;  %v821_v45 = vpop.f32.mrb[6].mxu0 }
  0xea   :  { %v209_v46 = vadd.f32 %v821_v45, %v1132_v32  ;;  %v203_v47 = vpop.f32.mrb[7].mxu0 }
  0xeb   :  { %v904_v48 = vpop.eup %903  ;;  %v204_v49 = vadd.f32 %v1132_v32, %v203_v47 }
  0xec   :  { %v906_v50 = vpop.eup %905  ;;  %915 = vtanh.f32 %v209_v46  ;;  %850 = vmatprep.mubr.msk.f32.mxu0 %vm283_vm2, %v904_v48 }
  0xed   :  { %917 = vtanh.f32 %v204_v49  ;;  %v824_v51 = vpop.f32.mrb[8].mxu0  ;;  %851 = vmatmul.mubr.msk.f32.vlgmr.msra.gmra.mrb[16].mxu0 %vm283_vm2, %v906_v50 }
  0xee   :  { %v219_v52 = vadd.f32 %v824_v51, %v1132_v32  ;;  %v213_v53 = vpop.f32.mrb[9].mxu0 }
  0xef   :  { %v908_v54 = vpop.eup %907  ;;  %v214_v55 = vadd.f32 %v1132_v32, %v213_v53 }
  0xf0   :  { %v910_v56 = vpop.eup %909  ;;  %919 = vtanh.f32 %v219_v52  ;;  %853 = vmatprep.mubr.msk.f32.mxu1 %vm283_vm2, %v908_v54 }
  0xf1   :  { %921 = vtanh.f32 %v214_v55  ;;  %v827_v57 = vpop.f32.mrb[10].mxu0  ;;  %854 = vmatmul.mubr.msk.f32.vlgmr.msra.gmra.mrb[0].mxu1 %vm283_vm2, %v910_v56 }
  0xf2   :  { %v912_v58 = vpop.eup %911  ;;  %v229_v59 = vadd.f32 %v827_v57, %v1132_v32  ;;  %v223_v60 = vpop.f32.mrb[11].mxu0 }
  0xf3   :  { %v914_v61 = vpop.eup %913  ;;  %v224_v62 = vadd.f32 %v1132_v32, %v223_v60 }
  0xf4   :  { %923 = vtanh.f32 %v229_v59  ;;  %856 = vmatprep.mubr.msk.f32.mxu1 %vm283_vm2, %v914_v61 }
  0xf5   :  { %925 = vtanh.f32 %v224_v62  ;;  %v830_v63 = vpop.f32.mrb[12].mxu0  ;;  %857 = vmatmul.mubr.msk.f32.gmra.mrb[2].mxu1 %vm283_vm2, %v912_v58 }
  0xf6   :  { %v916_v0 = vpop.eup %915  ;;  %v239_v1 = vadd.f32 %v830_v63, %v1132_v32  ;;  %v233_v2 = vpop.f32.mrb[13].mxu0 }
  0xf7   :  { %v918_v3 = vpop.eup %917  ;;  %v234_v4 = vadd.f32 %v1132_v32, %v233_v2 }
  0xf8   :  { %927 = vtanh.f32 %v239_v1  ;;  %859 = vmatprep.mubr.msk.f32.mxu1 %vm283_vm2, %v918_v3 }
  0xf9   :  { %929 = vtanh.f32 %v234_v4  ;;  %v833_v5 = vpop.f32.mrb[14].mxu0  ;;  %860 = vmatmul.mubr.msk.f32.gmra.mrb[4].mxu1 %vm283_vm2, %v916_v0 }
  0xfa   :  { %v920_v6 = vpop.eup %919  ;;  %v249_v7 = vadd.f32 %v833_v5, %v1132_v32  ;;  %v243_v8 = vpop.f32.mrb[15].mxu0 }
  0xfb   :  { %v922_v9 = vpop.eup %921  ;;  %v244_v10 = vadd.f32 %v1132_v32, %v243_v8 }
  0xfc   :  { %931 = vtanh.f32 %v249_v7  ;;  %862 = vmatprep.mubr.msk.f32.mxu1 %vm283_vm2, %v922_v9 }
  0xfd   :  { %933 = vtanh.f32 %v244_v10  ;;  %863 = vmatmul.mubr.msk.f32.gmra.mrb[6].mxu1 %vm283_vm2, %v920_v6 }
  0xfe   :  { %v924_v11 = vpop.eup %923 }
  0xff   :  { %v926_v12 = vpop.eup %925 }
 0x100   :  { %865 = vmatprep.mubr.msk.f32.mxu1 %vm283_vm2, %v926_v12 }
 0x101   :  { %866 = vmatmul.mubr.msk.f32.gmra.mrb[8].mxu1 %vm283_vm2, %v924_v11 }
 0x102   :  { %v928_v13 = vpop.eup %927 }
 0x103   :  { %v930_v14 = vpop.eup %929 }
 0x104   :  { %868 = vmatprep.mubr.msk.f32.mxu1 %vm283_vm2, %v930_v14 }
 0x105   :  { %869 = vmatmul.mubr.msk.f32.gmra.mrb[10].mxu1 %vm283_vm2, %v928_v13 }
 0x106   :  { %v932_v15 = vpop.eup %931 }
 0x107   :  { %v934_v16 = vpop.eup %933 }
 0x108   :  { %871 = vmatprep.mubr.msk.f32.mxu1 %vm283_vm2, %v934_v16 }
 0x109   :  { %872 = vmatmul.mubr.msk.f32.gmra.mrb[12].mxu1 %vm283_vm2, %v932_v15 }
 0x1c0   :  { %v852_v18 = vpop.f32.mrb[16].mxu0 }
 0x1c1   :  { %v404_v19 = vadd.f32 %v852_v18, %v1169_v17  ;;  %v398_v20 = vpop.f32.mrb[17].mxu0 }
 0x1c2   :  { %v399_v21 = vadd.f32 %v1169_v17, %v398_v20 }
 0x1c3   :  { %935 = vtanh.f32 %v404_v19 }
 0x1c4   :  { %937 = vtanh.f32 %v399_v21  ;;  %v855_v22 = vpop.f32.mrb[0].mxu1 }
 0x1c5   :  { %v414_v23 = vadd.f32 %v855_v22, %v1169_v17  ;;  %v408_v24 = vpop.f32.mrb[1].mxu1 }
 0x1c6   :  { %v409_v25 = vadd.f32 %v1169_v17, %v408_v24 }
 0x1c7   :  { %939 = vtanh.f32 %v414_v23 }
 0x1c8   :  { %941 = vtanh.f32 %v409_v25  ;;  %v858_v26 = vpop.f32.mrb[2].mxu1 }
 0x1c9   :  { %v424_v27 = vadd.f32 %v858_v26, %v1169_v17  ;;  %v418_v28 = vpop.f32.mrb[3].mxu1 }
 0x1ca   :  { %v419_v29 = vadd.f32 %v1169_v17, %v418_v28 }
 0x1cb   :  { %943 = vtanh.f32 %v424_v27 }
 0x1cc   :  { %945 = vtanh.f32 %v419_v29  ;;  %v861_v31 = vpop.f32.mrb[4].mxu1 }
 0x1cd   :  { %v936_v32 = vpop.eup %935  ;;  %v434_v33 = vadd.f32 %v861_v31, %v1169_v17  ;;  %v428_v34 = vpop.f32.mrb[5].mxu1 }
 0x1ce   :  { %v938_v35 = vpop.eup %937  ;;  %v429_v36 = vadd.f32 %v1169_v17, %v428_v34  ;;  %v501_v37 = vmul.f32 %v936_v32, %v1180_v30 }
 0x1cf   :  { %947 = vtanh.f32 %v434_v33  ;;  %v500_v40 = vmul.f32 %v938_v35, %v1180_v30 }
 0x1d0   :  { %949 = vtanh.f32 %v429_v36  ;;  %v864_v38 = vpop.f32.mrb[6].mxu1  ;;  %v519_v39 = vsel %vm283_vm2, %v501_v37, 0.0  ;;  %v598_v36 = vlaneseq }
 0x1d1   :  { %v940_v41 = vpop.eup %939  ;;  %v444_v42 = vadd.f32 %v864_v38, %v1169_v17  ;;  %v438_v43 = vpop.f32.mrb[7].mxu1  ;;  %520 = vadd.xlane.f32.xlu0 %v519_v39  ;;  %v516_v49 = vsel %vm283_vm2, %v500_v40, 0.0 }
 0x1d2   :  { %v942_v44 = vpop.eup %941  ;;  %v439_v45 = vadd.f32 %v1169_v17, %v438_v43  ;;  %v503_v46 = vmul.f32 %v940_v41, %v1180_v30  ;;  %v1224_v37 = vand.u32 127, %v598_v36  ;;  %v1226_v39 = vshrl.u32 %v598_v36, 7 }
 0x1d3   :  { %951 = vtanh.f32 %v444_v42  ;;  %v502_v50 = vmul.f32 %v942_v44, %v1180_v30  ;;  %v1232_v41 = vstv %s1300_s6  ;;  %s991_s6 = smov [#allocation3]  }
 0x1d4   :  { %953 = vtanh.f32 %v439_v45  ;;  %v867_v47 = vpop.f32.mrb[8].mxu1  ;;  %v525_v48 = vsel %vm283_vm2, %v503_v46, 0.0  ;;  %v604_v40 = vadd.s32 4294967288, %v1224_v37  ;;  %v618_v42 = vadd.s32 4294967272, %v1224_v37  ;;  %s717_s10 = sshll.u32 %s991_s6, 4  ;;  %s718_s10 = int_to_ptr.vmem [resolvable:$true] %s717_s10 }
 0x1d5   :  { %v944_v51 = vpop.eup %943  ;;  %v454_v52 = vadd.f32 %v867_v47, %v1169_v17  ;;  %526 = vadd.xlane.f32.xlu1 %v525_v48  ;;  %v448_v53 = vpop.f32.mrb[9].mxu1  ;;  %517 = vadd.xlane.f32.xlu0 %v516_v49  ;;  %v522_v58 = vsel %vm283_vm2, %v502_v50, 0.0  ;;  %v602_v44 = vsub.s32 %v1224_v37, %v1226_v39  ;;  %v625_v46 = vadd.s32 4294967264, %v1224_v37  ;;  %s967_s11 = scalar_lea.vmem %s718_s10, 16  ;;  %s971_s12 = scalar_lea.vmem %s718_s10, 32 }
 0x1d6   :  { %v946_v54 = vpop.eup %945  ;;  %v449_v55 = vadd.f32 %v1169_v17, %v448_v53  ;;  %v505_v59 = vmul.f32 %v944_v51, %v1180_v30  ;;  %v607_v48 = vsub.s32 %v604_v40, %v1226_v39  ;;  %v632_v50 = vadd.s32 4294967256, %v1224_v37  ;;  %p968_p0 = scmp.ne.s32.totalorder %s718_s10, %s967_s11  ;;  %p972_p1 = scmp.lt.s32.totalorder %s718_s10, %s718_s10 }
 0x1d7   :  { %955 = vtanh.f32 %v454_v52  ;;  %v504_v56 = vmul.f32 %v946_v54, %v1180_v30  ;;  %v639_v52 = vadd.s32 4294967248, %v1224_v37  ;;  %v621_v53 = vsub.s32 %v618_v42, %v1226_v39  ;;  %p973_p2 = scmp.lt.s32.totalorder %s971_s12, %s967_s11 }
 0x1d8   :  { %957 = vtanh.f32 %v449_v55  ;;  %v870_v57 = vpop.f32.mrb[10].mxu1  ;;  %v531_v4 = vsel %vm283_vm2, %v505_v59, 0.0 }
 0x1d9   :  { %v948_v60 = vpop.eup %947  ;;  %v464_v61 = vadd.f32 %v870_v57, %v1169_v17  ;;  %v458_v62 = vpop.f32.mrb[11].mxu1  ;;  %523 = vadd.xlane.f32.xlu1 %v522_v58  ;;  %v528_v63 = vsel %vm283_vm2, %v504_v56, 0.0  ;;  %v628_v57 = vsub.s32 %v625_v46, %v1226_v39  ;;  %v695_v46 = vadd.s32 4294967184, %v1224_v37  ;;  %p974_p3 = por %p973_p2, %p972_p1 }
 0x1da   :  { %v950_v0 = vpop.eup %949  ;;  %v459_v1 = vadd.f32 %v1169_v17, %v458_v62  ;;  %529 = vadd.xlane.f32.xlu0 %v528_v63  ;;  %v507_v5 = vmul.f32 %v948_v60, %v1180_v30  ;;  %v635_v62 = vsub.s32 %v632_v50, %v1226_v39 }
 0x1db   :  { %959 = vtanh.f32 %v464_v61  ;;  %v506_v2 = vmul.f32 %v950_v0, %v1180_v30  ;;  %v642_v0 = vsub.s32 %v639_v52, %v1226_v39  ;;  %p975_p4 = pnand %p974_p3, %p968_p0 }
 0x1dc   :  { %961 = vtanh.f32 %v459_v1  ;;  %v873_v3 = vpop.f32.mrb[12].mxu1  ;;  %v537_v13 = vsel %vm283_vm2, %v507_v5, 0.0  ;;  %v646_v1 = vadd.s32 4294967240, %v1224_v37 }
 0x1dd   :  { %v952_v6 = vpop.eup %951  ;;  %v474_v7 = vadd.f32 %v873_v3, %v1169_v17  ;;  %v468_v8 = vpop.f32.mrb[13].mxu1  ;;  %532 = vadd.xlane.f32.xlu1 %v531_v4  ;;  %v534_v9 = vsel %vm283_vm2, %v506_v2, 0.0 }
 0x1de   :  { %v954_v10 = vpop.eup %953  ;;  %v469_v11 = vadd.f32 %v1169_v17, %v468_v8  ;;  %535 = vadd.xlane.f32.xlu0 %v534_v9  ;;  %v509_v14 = vmul.f32 %v952_v6, %v1180_v30  ;;  %v653_v6 = vadd.s32 4294967232, %v1224_v37 }
 0x1df   :  { %963 = vtanh.f32 %v474_v7  ;;  %v508_v12 = vmul.f32 %v954_v10, %v1180_v30 }
 0x1e0   :  { %965 = vtanh.f32 %v469_v11  ;;  %v543_v20 = vsel %vm283_vm2, %v509_v14, 0.0  ;;  %v649_v14 = vsub.s32 %v646_v1, %v1226_v39 }
 0x1e1   :  { %v956_v15 = vpop.eup %955  ;;  %538 = vadd.xlane.f32.xlu1 %v537_v13  ;;  %v540_v16 = vsel %vm283_vm2, %v508_v12, 0.0 }
 0x1e2   :  { %v958_v18 = vpop.eup %957  ;;  %541 = vadd.xlane.f32.xlu0 %v540_v16  ;;  %v511_v17 = vmul.f32 %v956_v15, %v1180_v30  ;;  %v660_v15 = vadd.s32 4294967224, %v1224_v37 }
 0x1e3   :  { %v510_v19 = vmul.f32 %v958_v18, %v1180_v30 }
 0x1e4   :  { %v549_v25 = vsel %vm283_vm2, %v511_v17, 0.0 }
 0x1e5   :  { %v960_v21 = vpop.eup %959  ;;  %544 = vadd.xlane.f32.xlu1 %v543_v20  ;;  %v546_v22 = vsel %vm283_vm2, %v510_v19, 0.0  ;;  %v656_v19 = vsub.s32 %v653_v6, %v1226_v39  ;;  %v667_v20 = vadd.s32 4294967216, %v1224_v37 }
 0x1e6   :  { %v962_v23 = vpop.eup %961  ;;  %547 = vadd.xlane.f32.xlu0 %v546_v22  ;;  %v513_v26 = vmul.f32 %v960_v21, %v1180_v30 }
 0x1e7   :  { %v512_v24 = vmul.f32 %v962_v23, %v1180_v30 }
 0x1e8   :  { %v555_v32 = vsel %vm283_vm2, %v513_v26, 0.0  ;;  %v674_v26 = vadd.s32 4294967208, %v1224_v37 }
 0x1e9   :  { %v964_v27 = vpop.eup %963  ;;  %550 = vadd.xlane.f32.xlu1 %v549_v25  ;;  %v552_v28 = vsel %vm283_vm2, %v512_v24, 0.0  ;;  %v663_v25 = vsub.s32 %v660_v15, %v1226_v39 }
 0x1ea   :  { %v966_v29 = vpop.eup %965  ;;  %553 = vadd.xlane.f32.xlu0 %v552_v28  ;;  %v515_v33 = vmul.f32 %v964_v27, %v1180_v30  ;;  %v677_v40 = vsub.s32 %v674_v26, %v1226_v39 }
 0x1eb   :  { %v514_v31 = vmul.f32 %v966_v29, %v1180_v30  ;;  %v611_v30 = vadd.s32 4294967280, %v1224_v37 }
 0x1ec   :  { %v561_v35 = vsel %vm283_vm2, %v515_v33, 0.0 }
 0x1ed   :  { %556 = vadd.xlane.f32.xlu1 %v555_v32  ;;  %v558_v34 = vsel %vm283_vm2, %v514_v31, 0.0  ;;  %v614_v51 = vsub.s32 %v611_v30, %v1226_v39  ;;  %v670_v31 = vsub.s32 %v667_v20, %v1226_v39  ;;  %v681_v32 = vadd.s32 4294967200, %v1224_v37 }
 0x1ee   :  { %559 = vadd.xlane.f32.xlu0 %v558_v34  ;;  %v688_v30 = vadd.s32 4294967192, %v1224_v37 }
 0x1f0   :  { %v691_v52 = vsub.s32 %v688_v30, %v1226_v39 }
 0x1f1   :  { %562 = vadd.xlane.f32.xlu1 %v561_v35 }
 0x25e   :  { %v521_v38 = vpop.xlane.xlu0 %520 }
 0x25f   :  { %v567_v49 = vadd.f32 %v1232_v41, %v521_v38 }
 0x261   :  { %v608_v60 = vrot.slane %v567_v49, %v607_v48 }
 0x262   :  { %v527_v43 = vpop.xlane.xlu1 %526  ;;  %v518_v45 = vpop.xlane.xlu0 %517 }
 0x263   :  { %v566_v47 = vadd.f32 %v1232_v41, %v518_v45  ;;  %v569_v54 = vadd.f32 %v1232_v41, %v527_v43  ;;  %v684_v45 = vsub.s32 %v681_v32, %v1226_v39 }
 0x265   :  { %v603_v55 = vrot.slane %v566_v47, %v602_v44  ;;  %v622_v2 = vrot.slane %v569_v54, %v621_v53  ;;  %v702_v53 = vadd.s32 4294967176, %v1224_v37 }
 0x266   :  { %v524_v56 = vpop.xlane.xlu1 %523 }
 0x267   :  { %v568_v58 = vadd.f32 %v1232_v41, %v524_v56  ;;  %v530_v59 = vpop.xlane.xlu0 %529  ;;  %v610_v3 = vsel %vm609_vm3, %v608_v60, %v603_v55 }
 0x268   :  { %v570_v61 = vadd.f32 %v1232_v41, %v530_v59 }
 0x269   :  { %v615_v63 = vrot.slane %v568_v58, %v614_v51 }
 0x26a   :  { %v629_v4 = vrot.slane %v570_v61, %v628_v57  ;;  %v533_v5 = vpop.xlane.xlu1 %532  ;;  %v698_v57 = vsub.s32 %v695_v46, %v1226_v39 }
 0x26b   :  { %v617_v7 = vsel %vm616_vm4, %v615_v63, %v610_v3  ;;  %v571_v8 = vadd.f32 %v1232_v41, %v533_v5  ;;  %v536_v9 = vpop.xlane.xlu0 %535  ;;  %v705_v63 = vsub.s32 %v702_v53, %v1226_v39 }
 0x26c   :  { %v624_v10 = vsel %vm623_vm5, %v622_v2, %v617_v7  ;;  %v572_v11 = vadd.f32 %v1232_v41, %v536_v9 }
 0x26d   :  { %v631_v12 = vsel %vm630_vm6, %v629_v4, %v624_v10  ;;  %v636_v13 = vrot.slane %v571_v8, %v635_v62 }
 0x26e   :  { %v643_v16 = vrot.slane %v572_v11, %v642_v0  ;;  %v539_v18 = vpop.xlane.xlu1 %538 }
 0x26f   :  { %v638_v17 = vsel %vm637_vm7, %v636_v13, %v631_v12  ;;  %v573_v21 = vadd.f32 %v1232_v41, %v539_v18  ;;  %v542_v22 = vpop.xlane.xlu0 %541 }
 0x270   :  { %v574_v23 = vadd.f32 %v1232_v41, %v542_v22  ;;  %v645_v27 = vsel %vm644_vm8, %v643_v16, %v638_v17 }
 0x271   :  { %v650_v24 = vrot.slane %v573_v21, %v649_v14 }
 0x272   :  { %v657_v28 = vrot.slane %v574_v23, %v656_v19  ;;  %v545_v29 = vpop.xlane.xlu1 %544 }
 0x273   :  { %v652_v33 = vsel %vm651_vm9, %v650_v24, %v645_v27  ;;  %v575_v34 = vadd.f32 %v1232_v41, %v545_v29  ;;  %v548_v35 = vpop.xlane.xlu0 %547 }
 0x274   :  { %v576_v36 = vadd.f32 %v1232_v41, %v548_v35  ;;  %v659_v42 = vsel %vm658_vm10, %v657_v28, %v652_v33 }
 0x275   :  { %v664_v38 = vrot.slane %v575_v34, %v663_v25 }
 0x276   :  { %v671_v43 = vrot.slane %v576_v36, %v670_v31  ;;  %v551_v44 = vpop.xlane.xlu1 %550 }
 0x277   :  { %v666_v47 = vsel %vm665_vm11, %v664_v38, %v659_v42  ;;  %v577_v48 = vadd.f32 %v1232_v41, %v551_v44  ;;  %v554_v49 = vpop.xlane.xlu0 %553 }
 0x278   :  { %v578_v50 = vadd.f32 %v1232_v41, %v554_v49  ;;  %v673_v54 = vsel %vm672_vm12, %v671_v43, %v666_v47 }
 0x279   :  { %v678_v51 = vrot.slane %v577_v48, %v677_v40 }
 0x27a   :  { %v685_v55 = vrot.slane %v578_v50, %v684_v45  ;;  %v557_v56 = vpop.xlane.xlu1 %556 }
 0x27b   :  { %v680_v58 = vsel %vm679_vm13, %v678_v51, %v673_v54  ;;  %v579_v59 = vadd.f32 %v1232_v41, %v557_v56  ;;  %v560_v60 = vpop.xlane.xlu0 %559 }
 0x27c   :  { %v580_v61 = vadd.f32 %v1232_v41, %v560_v60  ;;  %v687_v0 = vsel %vm686_vm14, %v685_v55, %v680_v58 }
 0x27d   :  { %v692_v62 = vrot.slane %v579_v59, %v691_v52 }
 0x27e   :  { %v699_v1 = vrot.slane %v580_v61, %v698_v57  ;;  %v563_v2 = vpop.xlane.xlu1 %562 }
 0x27f   :  { %v581_v37 = vadd.f32 %v1232_v41, %v563_v2  ;;  %v694_v3 = vsel %vm693_vm15, %v692_v62, %v687_v0 }
 0x280   :  { %v701_v5 = vsel %vm700_vm0, %v699_v1, %v694_v3 }
 0x281   :  { %v706_v4 = vrot.slane %v581_v37, %v705_v63 }
 0x283   :  { %v708_v6 = vsel %vm707_vm1, %v706_v4, %v701_v5 }
 0x284   :  { %710 = vst [vmem:[#allocation3] sm:$0x1] %v708_v6 }
 0x285   :  { %978 = shalt.err (!%p975_p4)
}
 0x286   :  { %s979_s15 = scalar_lea.hbm %s1301_s7, 16 }
 0x287   :  { %p980_p5 = scmp.ne.s32.totalorder %s1301_s7, %s979_s15  ;;  %p983_p6 = scmp.lt.u32.totalorder %s979_s15, %s1301_s7 }
 0x289   :  { %p985_p7 = pnand %p983_p6, %p980_p5 }
 0x28b   :  { %988 = shalt.err (!%p985_p7)
}
 0x28c   :  { %720 = dma.vmem_to_hbm [thread:$0]  %s718_s10, 16, %s1301_s7, [#allocation4]  }
 0x28d   :  { %989 = dma.done.wait [#allocation4], 16  }
 0x28e   :  { %990 = vsyncadd [#allocation4], 4294967280 }
 0x28f   :  { %724 = vsyncpa [#allocation4], 1 }

</bundles_post_ra>
